<compile_context>
chip_gen: v5e
topology: v5e:2x2
jax: 0.10.0
libtpu: 0.0.40
codegen_flags: <defaults>
</compile_context>

<pallas_src>
import functools

import jax
import jax.numpy as jnp
from jax import lax
from jax.experimental import pallas as pl
from jax.experimental.pallas import tpu as pltpu

_CHUNK = 512       # lanes processed per inner-loop step (4 f32 vregs wide)
_MAX_TB = 32768    # max batch columns per grid step (VMEM-safe on v5e..v7x)


def _round_up(v, m):
    return (v + m - 1) // m * m


def _linear_relu(w, b, x):
    """relu(w @ x + b) as unrolled VPU broadcast-MACs.

    w: (out, k), b: (out, 1), x: (k, CHUNK) with batch on the lane axis.
    k <= 12, so unrolled MACs keep all 128 lanes busy and avoid serializing
    tiny (<5% utilized) matmuls on the v5e/v6e MXU result FIFO.
    """
    _, kf = w.shape
    acc = w[:, 0:1] * x[0:1, :] + b
    for k in range(1, kf):
        acc = acc + w[:, k:k + 1] * x[k:k + 1, :]
    return jnp.maximum(acc, 0.0)


def mlp_softmax_kernel(x_ref, w1_ref, b1_ref, w2_ref, b2_ref, w3_ref, b3_ref,
                       probs_ref, labels_ref, *, n_chunks):
    """x_ref: (NCB, 4, CHUNK) -> probs_ref: (NCB, 2, CHUNK) f32,
                                  labels_ref: (NCB, 1, CHUNK) i32."""
    w1 = w1_ref[...]; b1 = b1_ref[...]
    w2 = w2_ref[...]; b2 = b2_ref[...]
    w3 = w3_ref[...]; b3 = b3_ref[...]

    chunk = x_ref.shape[-1]
    # Hoisted row-index mask (row 0 vs row 1 of the 2-class output).
    row0 = lax.broadcasted_iota(jnp.int32, (2, chunk), 0) == 0

    def chunk_body(c, carry):
        x = x_ref[c]                                   # (4, CHUNK)
        h = _linear_relu(w1, b1, x)                    # (12, CHUNK)
        h = _linear_relu(w2, b2, h)                    # (4, CHUNK)
        h = _linear_relu(w3, b3, h)                    # (2, CHUNK)

        # 2-class softmax == logistic on z = h0 - h1.
        z = h[0:1, :] - h[1:2, :]                      # (1, CHUNK)
        p1 = pl.reciprocal(1.0 + jnp.exp(z), approx=True)
        p1b = jnp.broadcast_to(p1, (2, chunk))
        probs_ref[c] = jnp.where(row0, 1.0 - p1b, p1b)           # (2, CHUNK)
        # predict(): 0 iff p0 > p1  <=>  h0 > h1 (ties -> 1, as in torch code).
        labels_ref[c] = jnp.where(z > 0.0, 0, 1).astype(jnp.int32)
        return carry

    lax.fori_loop(0, n_chunks, chunk_body, 0, unroll=bool(n_chunks <= 8))


@jax.jit
def net_predict(x, params):
    """Returns (probs (B, 2) f32, labels (B,) int32) matching Net.predict."""
    w1, b1, w2, b2, w3, b3 = params            # w: (out, in), b: (out, 1)
    B = x.shape[0]

    # Tile selection: aim for ~8 grid steps (v7x megacore sharding + pipeline
    # depth), each step as large as comfortably fits double-buffered in VMEM.
    b_align = _round_up(max(B, 1), _CHUNK)
    tb = _round_up(max(b_align // 8, _CHUNK), _CHUNK)
    TB = min(_MAX_TB, tb, b_align)             # multiple of _CHUNK
    Bp = _round_up(max(B, 1), TB)
    NC = Bp // _CHUNK                          # total 512-lane chunks
    NCB = TB // _CHUNK                         # chunks per grid step
    grid = Bp // TB

    # Feature-major, chunked input (NC, 4, CHUNK): batch rides the lane axis.
    xt = jnp.pad(x.astype(jnp.float32), ((0, Bp - B), (0, 0)))
    xt = xt.reshape(NC, _CHUNK, 4).transpose(0, 2, 1)
    # TODO(synk): accept feature-major input upstream to drop this single
    # wrapper-side transposed copy (the kernel itself is already lane-dense).

    const = lambda i: (0, 0)
    probs_nc, labels_nc = pl.pallas_call(
        functools.partial(mlp_softmax_kernel, n_chunks=NCB),
        out_shape=(jax.ShapeDtypeStruct((NC, 2, _CHUNK), jnp.float32),
                   jax.ShapeDtypeStruct((NC, 1, _CHUNK), jnp.int32)),
        grid=(grid,),
        in_specs=[
            pl.BlockSpec((NCB, 4, _CHUNK), lambda i: (i, 0, 0)),  # activations
            pl.BlockSpec(w1.shape, const),     # weights/biases stay VMEM-resident
            pl.BlockSpec(b1.shape, const),
            pl.BlockSpec(w2.shape, const),
            pl.BlockSpec(b2.shape, const),
            pl.BlockSpec(w3.shape, const),
            pl.BlockSpec(b3.shape, const),
        ],
        out_specs=(pl.BlockSpec((NCB, 2, _CHUNK), lambda i: (i, 0, 0)),
                   pl.BlockSpec((NCB, 1, _CHUNK), lambda i: (i, 0, 0))),
        compiler_params=pltpu.CompilerParams(
            dimension_semantics=("parallel",)),   # megacore-shard the batch axis
    )(xt, w1, b1, w2, b2, w3, b3)

    probs = jnp.transpose(probs_nc, (0, 2, 1)).reshape(Bp, 2)[:B]
    labels = labels_nc.reshape(Bp)[:B]
    return probs, labels


def init_params(key):
    """Deterministic init mimicking torch.nn.Linear (uniform +-1/sqrt(fan_in)).

    Weights kept in torch layout (out_features, in_features); bias (out, 1).
    """
    def linear(key, fan_in, fan_out):
        kw, kb = jax.random.split(key)
        bound = float(fan_in) ** -0.5
        w = jax.random.uniform(kw, (fan_out, fan_in), jnp.float32, -bound, bound)
        b = jax.random.uniform(kb, (fan_out, 1), jnp.float32, -bound, bound)
        return w, b

    k1, k2, k3 = jax.random.split(key, 3)
    w1, b1 = linear(k1, 4, 12)
    w2, b2 = linear(k2, 12, 4)
    w3, b3 = linear(k3, 4, 2)
    return w1, b1, w2, b2, w3, b3


if __name__ == "__main__":
    key = jax.random.PRNGKey(0)
    pkey, xkey = jax.random.split(key)
    params = init_params(pkey)
    w1, b1, w2, b2, w3, b3 = params

    def reference(x):
        # Pure-JAX reference: same math as torch Net.predict (incl. ReLU on fc3).
        h = jnp.maximum(x @ w1.T + b1.T, 0.0)
        h = jnp.maximum(h @ w2.T + b2.T, 0.0)
        h = jnp.maximum(h @ w3.T + b3.T, 0.0)
        p = jax.nn.softmax(h, axis=1)
        l = jnp.where(p[:, 0] > p[:, 1], 0, 1).astype(jnp.int32)
        return p, l

    for B in (8, 2048):          # tiny batch + a multi-grid-step batch
        xk = jax.random.fold_in(xkey, B)
        x = jax.random.normal(xk, (B, 4), dtype=jnp.float32)

        probs, labels = net_predict(x, params)
        jax.block_until_ready((probs, labels))

        ref_p, ref_l = reference(x)
        assert probs.shape == (B, 2) and labels.shape == (B,)
        assert jnp.allclose(jnp.sum(probs, axis=-1), 1.0, atol=1e-4)
        assert jnp.allclose(probs, ref_p, atol=2e-3, rtol=2e-3)  # approx-recip tol
        assert jnp.array_equal(labels, ref_l)

    print("KERNEL_OK")
</pallas_src>

<mosaic_0001>
module attributes {stable_mosaic.version = 11 : i64} {
  func.func @mlp_softmax_kernel(%arg0: i32, %arg1: memref<1x4x512xf32, #tpu.memory_space<vmem>>, %arg2: memref<12x4xf32, #tpu.memory_space<vmem>>, %arg3: memref<12x1xf32, #tpu.memory_space<vmem>>, %arg4: memref<4x12xf32, #tpu.memory_space<vmem>>, %arg5: memref<4x1xf32, #tpu.memory_space<vmem>>, %arg6: memref<2x4xf32, #tpu.memory_space<vmem>>, %arg7: memref<2x1xf32, #tpu.memory_space<vmem>>, %arg8: memref<1x2x512xf32, #tpu.memory_space<vmem>>, %arg9: memref<1x1x512xi32, #tpu.memory_space<vmem>>) attributes {dimension_semantics = [#tpu.dimension_semantics<parallel>], iteration_bounds = array<i64: 1>, scalar_prefetch = 0 : i64, scratch_operands = 0 : i64, tpu.core_type = #tpu.core_type<tc>, window_params = [{transform_indices = @transform_0, window_bounds = array<i64: 1, 4, 512>}, {pipeline_mode = #tpu.pipeline_mode<synchronous>, transform_indices = @transform_1, window_bounds = array<i64: 12, 4>}, {pipeline_mode = #tpu.pipeline_mode<synchronous>, transform_indices = @transform_2, window_bounds = array<i64: 12, 1>}, {pipeline_mode = #tpu.pipeline_mode<synchronous>, transform_indices = @transform_3, window_bounds = array<i64: 4, 12>}, {pipeline_mode = #tpu.pipeline_mode<synchronous>, transform_indices = @transform_4, window_bounds = array<i64: 4, 1>}, {pipeline_mode = #tpu.pipeline_mode<synchronous>, transform_indices = @transform_5, window_bounds = array<i64: 2, 4>}, {pipeline_mode = #tpu.pipeline_mode<synchronous>, transform_indices = @transform_6, window_bounds = array<i64: 2, 1>}, {transform_indices = @transform_7, window_bounds = array<i64: 1, 2, 512>}, {transform_indices = @transform_8, window_bounds = array<i64: 1, 1, 512>}]} {
    %c0 = arith.constant 0 : index
    %c0_0 = arith.constant 0 : index
    %0 = vector.load %arg2[%c0, %c0_0] : memref<12x4xf32, #tpu.memory_space<vmem>>, vector<12x4xf32>
    %c0_1 = arith.constant 0 : index
    %c0_2 = arith.constant 0 : index
    %1 = vector.load %arg3[%c0_1, %c0_2] : memref<12x1xf32, #tpu.memory_space<vmem>>, vector<12x1xf32>
    %c0_3 = arith.constant 0 : index
    %c0_4 = arith.constant 0 : index
    %2 = vector.load %arg4[%c0_3, %c0_4] : memref<4x12xf32, #tpu.memory_space<vmem>>, vector<4x12xf32>
    %c0_5 = arith.constant 0 : index
    %c0_6 = arith.constant 0 : index
    %3 = vector.load %arg5[%c0_5, %c0_6] : memref<4x1xf32, #tpu.memory_space<vmem>>, vector<4x1xf32>
    %c0_7 = arith.constant 0 : index
    %c0_8 = arith.constant 0 : index
    %4 = vector.load %arg6[%c0_7, %c0_8] : memref<2x4xf32, #tpu.memory_space<vmem>>, vector<2x4xf32>
    %c0_9 = arith.constant 0 : index
    %c0_10 = arith.constant 0 : index
    %5 = vector.load %arg7[%c0_9, %c0_10] : memref<2x1xf32, #tpu.memory_space<vmem>>, vector<2x1xf32>
    %6 = tpu.iota {dimensions = array<i32: 0>} : vector<2x512xi32>
    %c0_i32 = arith.constant 0 : i32
    %7 = vector.broadcast %c0_i32 : i32 to vector<2x512xi32>
    %8 = arith.cmpi eq, %6, %7 : vector<2x512xi32>
    %c0_i32_11 = arith.constant 0 : i32
    %9 = arith.index_cast %c0_i32_11 : i32 to index
    %c0_12 = arith.constant 0 : index
    %c0_13 = arith.constant 0 : index
    %10 = vector.load %arg1[%9, %c0_12, %c0_13] : memref<1x4x512xf32, #tpu.memory_space<vmem>>, vector<1x4x512xf32>
    %11 = vector.shape_cast %10 : vector<1x4x512xf32> to vector<4x512xf32>
    %12 = vector.extract_strided_slice %0 {offsets = [0, 0], sizes = [12, 1], strides = [1, 1]} : vector<12x4xf32> to vector<12x1xf32>
    %13 = vector.extract_strided_slice %11 {offsets = [0, 0], sizes = [1, 512], strides = [1, 1]} : vector<4x512xf32> to vector<1x512xf32>
    %14 = vector.broadcast %12 : vector<12x1xf32> to vector<12x512xf32>
    %15 = vector.broadcast %13 : vector<1x512xf32> to vector<12x512xf32>
    %16 = arith.mulf %14, %15 : vector<12x512xf32>
    %17 = vector.broadcast %1 : vector<12x1xf32> to vector<12x512xf32>
    %18 = arith.addf %16, %17 : vector<12x512xf32>
    %19 = vector.extract_strided_slice %0 {offsets = [0, 1], sizes = [12, 1], strides = [1, 1]} : vector<12x4xf32> to vector<12x1xf32>
    %20 = vector.extract_strided_slice %11 {offsets = [1, 0], sizes = [1, 512], strides = [1, 1]} : vector<4x512xf32> to vector<1x512xf32>
    %21 = vector.broadcast %19 : vector<12x1xf32> to vector<12x512xf32>
    %22 = vector.broadcast %20 : vector<1x512xf32> to vector<12x512xf32>
    %23 = arith.mulf %21, %22 : vector<12x512xf32>
    %24 = arith.addf %18, %23 : vector<12x512xf32>
    %25 = vector.extract_strided_slice %0 {offsets = [0, 2], sizes = [12, 1], strides = [1, 1]} : vector<12x4xf32> to vector<12x1xf32>
    %26 = vector.extract_strided_slice %11 {offsets = [2, 0], sizes = [1, 512], strides = [1, 1]} : vector<4x512xf32> to vector<1x512xf32>
    %27 = vector.broadcast %25 : vector<12x1xf32> to vector<12x512xf32>
    %28 = vector.broadcast %26 : vector<1x512xf32> to vector<12x512xf32>
    %29 = arith.mulf %27, %28 : vector<12x512xf32>
    %30 = arith.addf %24, %29 : vector<12x512xf32>
    %31 = vector.extract_strided_slice %0 {offsets = [0, 3], sizes = [12, 1], strides = [1, 1]} : vector<12x4xf32> to vector<12x1xf32>
    %32 = vector.extract_strided_slice %11 {offsets = [3, 0], sizes = [1, 512], strides = [1, 1]} : vector<4x512xf32> to vector<1x512xf32>
    %33 = vector.broadcast %31 : vector<12x1xf32> to vector<12x512xf32>
    %34 = vector.broadcast %32 : vector<1x512xf32> to vector<12x512xf32>
    %35 = arith.mulf %33, %34 : vector<12x512xf32>
    %36 = arith.addf %30, %35 : vector<12x512xf32>
    %cst = arith.constant 0.000000e+00 : f32
    %37 = vector.broadcast %cst : f32 to vector<12x512xf32>
    %38 = arith.maximumf %36, %37 : vector<12x512xf32>
    %39 = vector.extract_strided_slice %2 {offsets = [0, 0], sizes = [4, 1], strides = [1, 1]} : vector<4x12xf32> to vector<4x1xf32>
    %40 = vector.extract_strided_slice %38 {offsets = [0, 0], sizes = [1, 512], strides = [1, 1]} : vector<12x512xf32> to vector<1x512xf32>
    %41 = vector.broadcast %39 : vector<4x1xf32> to vector<4x512xf32>
    %42 = vector.broadcast %40 : vector<1x512xf32> to vector<4x512xf32>
    %43 = arith.mulf %41, %42 : vector<4x512xf32>
    %44 = vector.broadcast %3 : vector<4x1xf32> to vector<4x512xf32>
    %45 = arith.addf %43, %44 : vector<4x512xf32>
    %46 = vector.extract_strided_slice %2 {offsets = [0, 1], sizes = [4, 1], strides = [1, 1]} : vector<4x12xf32> to vector<4x1xf32>
    %47 = vector.extract_strided_slice %38 {offsets = [1, 0], sizes = [1, 512], strides = [1, 1]} : vector<12x512xf32> to vector<1x512xf32>
    %48 = vector.broadcast %46 : vector<4x1xf32> to vector<4x512xf32>
    %49 = vector.broadcast %47 : vector<1x512xf32> to vector<4x512xf32>
    %50 = arith.mulf %48, %49 : vector<4x512xf32>
    %51 = arith.addf %45, %50 : vector<4x512xf32>
    %52 = vector.extract_strided_slice %2 {offsets = [0, 2], sizes = [4, 1], strides = [1, 1]} : vector<4x12xf32> to vector<4x1xf32>
    %53 = vector.extract_strided_slice %38 {offsets = [2, 0], sizes = [1, 512], strides = [1, 1]} : vector<12x512xf32> to vector<1x512xf32>
    %54 = vector.broadcast %52 : vector<4x1xf32> to vector<4x512xf32>
    %55 = vector.broadcast %53 : vector<1x512xf32> to vector<4x512xf32>
    %56 = arith.mulf %54, %55 : vector<4x512xf32>
    %57 = arith.addf %51, %56 : vector<4x512xf32>
    %58 = vector.extract_strided_slice %2 {offsets = [0, 3], sizes = [4, 1], strides = [1, 1]} : vector<4x12xf32> to vector<4x1xf32>
    %59 = vector.extract_strided_slice %38 {offsets = [3, 0], sizes = [1, 512], strides = [1, 1]} : vector<12x512xf32> to vector<1x512xf32>
    %60 = vector.broadcast %58 : vector<4x1xf32> to vector<4x512xf32>
    %61 = vector.broadcast %59 : vector<1x512xf32> to vector<4x512xf32>
    %62 = arith.mulf %60, %61 : vector<4x512xf32>
    %63 = arith.addf %57, %62 : vector<4x512xf32>
    %64 = vector.extract_strided_slice %2 {offsets = [0, 4], sizes = [4, 1], strides = [1, 1]} : vector<4x12xf32> to vector<4x1xf32>
    %65 = vector.extract_strided_slice %38 {offsets = [4, 0], sizes = [1, 512], strides = [1, 1]} : vector<12x512xf32> to vector<1x512xf32>
    %66 = vector.broadcast %64 : vector<4x1xf32> to vector<4x512xf32>
    %67 = vector.broadcast %65 : vector<1x512xf32> to vector<4x512xf32>
    %68 = arith.mulf %66, %67 : vector<4x512xf32>
    %69 = arith.addf %63, %68 : vector<4x512xf32>
    %70 = vector.extract_strided_slice %2 {offsets = [0, 5], sizes = [4, 1], strides = [1, 1]} : vector<4x12xf32> to vector<4x1xf32>
    %71 = vector.extract_strided_slice %38 {offsets = [5, 0], sizes = [1, 512], strides = [1, 1]} : vector<12x512xf32> to vector<1x512xf32>
    %72 = vector.broadcast %70 : vector<4x1xf32> to vector<4x512xf32>
    %73 = vector.broadcast %71 : vector<1x512xf32> to vector<4x512xf32>
    %74 = arith.mulf %72, %73 : vector<4x512xf32>
    %75 = arith.addf %69, %74 : vector<4x512xf32>
    %76 = vector.extract_strided_slice %2 {offsets = [0, 6], sizes = [4, 1], strides = [1, 1]} : vector<4x12xf32> to vector<4x1xf32>
    %77 = vector.extract_strided_slice %38 {offsets = [6, 0], sizes = [1, 512], strides = [1, 1]} : vector<12x512xf32> to vector<1x512xf32>
    %78 = vector.broadcast %76 : vector<4x1xf32> to vector<4x512xf32>
    %79 = vector.broadcast %77 : vector<1x512xf32> to vector<4x512xf32>
    %80 = arith.mulf %78, %79 : vector<4x512xf32>
    %81 = arith.addf %75, %80 : vector<4x512xf32>
    %82 = vector.extract_strided_slice %2 {offsets = [0, 7], sizes = [4, 1], strides = [1, 1]} : vector<4x12xf32> to vector<4x1xf32>
    %83 = vector.extract_strided_slice %38 {offsets = [7, 0], sizes = [1, 512], strides = [1, 1]} : vector<12x512xf32> to vector<1x512xf32>
    %84 = vector.broadcast %82 : vector<4x1xf32> to vector<4x512xf32>
    %85 = vector.broadcast %83 : vector<1x512xf32> to vector<4x512xf32>
    %86 = arith.mulf %84, %85 : vector<4x512xf32>
    %87 = arith.addf %81, %86 : vector<4x512xf32>
    %88 = vector.extract_strided_slice %2 {offsets = [0, 8], sizes = [4, 1], strides = [1, 1]} : vector<4x12xf32> to vector<4x1xf32>
    %89 = vector.extract_strided_slice %38 {offsets = [8, 0], sizes = [1, 512], strides = [1, 1]} : vector<12x512xf32> to vector<1x512xf32>
    %90 = vector.broadcast %88 : vector<4x1xf32> to vector<4x512xf32>
    %91 = vector.broadcast %89 : vector<1x512xf32> to vector<4x512xf32>
    %92 = arith.mulf %90, %91 : vector<4x512xf32>
    %93 = arith.addf %87, %92 : vector<4x512xf32>
    %94 = vector.extract_strided_slice %2 {offsets = [0, 9], sizes = [4, 1], strides = [1, 1]} : vector<4x12xf32> to vector<4x1xf32>
    %95 = vector.extract_strided_slice %38 {offsets = [9, 0], sizes = [1, 512], strides = [1, 1]} : vector<12x512xf32> to vector<1x512xf32>
    %96 = vector.broadcast %94 : vector<4x1xf32> to vector<4x512xf32>
    %97 = vector.broadcast %95 : vector<1x512xf32> to vector<4x512xf32>
    %98 = arith.mulf %96, %97 : vector<4x512xf32>
    %99 = arith.addf %93, %98 : vector<4x512xf32>
    %100 = vector.extract_strided_slice %2 {offsets = [0, 10], sizes = [4, 1], strides = [1, 1]} : vector<4x12xf32> to vector<4x1xf32>
    %101 = vector.extract_strided_slice %38 {offsets = [10, 0], sizes = [1, 512], strides = [1, 1]} : vector<12x512xf32> to vector<1x512xf32>
    %102 = vector.broadcast %100 : vector<4x1xf32> to vector<4x512xf32>
    %103 = vector.broadcast %101 : vector<1x512xf32> to vector<4x512xf32>
    %104 = arith.mulf %102, %103 : vector<4x512xf32>
    %105 = arith.addf %99, %104 : vector<4x512xf32>
    %106 = vector.extract_strided_slice %2 {offsets = [0, 11], sizes = [4, 1], strides = [1, 1]} : vector<4x12xf32> to vector<4x1xf32>
    %107 = vector.extract_strided_slice %38 {offsets = [11, 0], sizes = [1, 512], strides = [1, 1]} : vector<12x512xf32> to vector<1x512xf32>
    %108 = vector.broadcast %106 : vector<4x1xf32> to vector<4x512xf32>
    %109 = vector.broadcast %107 : vector<1x512xf32> to vector<4x512xf32>
    %110 = arith.mulf %108, %109 : vector<4x512xf32>
    %111 = arith.addf %105, %110 : vector<4x512xf32>
    %cst_14 = arith.constant 0.000000e+00 : f32
    %112 = vector.broadcast %cst_14 : f32 to vector<4x512xf32>
    %113 = arith.maximumf %111, %112 : vector<4x512xf32>
    %114 = vector.extract_strided_slice %4 {offsets = [0, 0], sizes = [2, 1], strides = [1, 1]} : vector<2x4xf32> to vector<2x1xf32>
    %115 = vector.extract_strided_slice %113 {offsets = [0, 0], sizes = [1, 512], strides = [1, 1]} : vector<4x512xf32> to vector<1x512xf32>
    %116 = vector.broadcast %114 : vector<2x1xf32> to vector<2x512xf32>
    %117 = vector.broadcast %115 : vector<1x512xf32> to vector<2x512xf32>
    %118 = arith.mulf %116, %117 : vector<2x512xf32>
    %119 = vector.broadcast %5 : vector<2x1xf32> to vector<2x512xf32>
    %120 = arith.addf %118, %119 : vector<2x512xf32>
    %121 = vector.extract_strided_slice %4 {offsets = [0, 1], sizes = [2, 1], strides = [1, 1]} : vector<2x4xf32> to vector<2x1xf32>
    %122 = vector.extract_strided_slice %113 {offsets = [1, 0], sizes = [1, 512], strides = [1, 1]} : vector<4x512xf32> to vector<1x512xf32>
    %123 = vector.broadcast %121 : vector<2x1xf32> to vector<2x512xf32>
    %124 = vector.broadcast %122 : vector<1x512xf32> to vector<2x512xf32>
    %125 = arith.mulf %123, %124 : vector<2x512xf32>
    %126 = arith.addf %120, %125 : vector<2x512xf32>
    %127 = vector.extract_strided_slice %4 {offsets = [0, 2], sizes = [2, 1], strides = [1, 1]} : vector<2x4xf32> to vector<2x1xf32>
    %128 = vector.extract_strided_slice %113 {offsets = [2, 0], sizes = [1, 512], strides = [1, 1]} : vector<4x512xf32> to vector<1x512xf32>
    %129 = vector.broadcast %127 : vector<2x1xf32> to vector<2x512xf32>
    %130 = vector.broadcast %128 : vector<1x512xf32> to vector<2x512xf32>
    %131 = arith.mulf %129, %130 : vector<2x512xf32>
    %132 = arith.addf %126, %131 : vector<2x512xf32>
    %133 = vector.extract_strided_slice %4 {offsets = [0, 3], sizes = [2, 1], strides = [1, 1]} : vector<2x4xf32> to vector<2x1xf32>
    %134 = vector.extract_strided_slice %113 {offsets = [3, 0], sizes = [1, 512], strides = [1, 1]} : vector<4x512xf32> to vector<1x512xf32>
    %135 = vector.broadcast %133 : vector<2x1xf32> to vector<2x512xf32>
    %136 = vector.broadcast %134 : vector<1x512xf32> to vector<2x512xf32>
    %137 = arith.mulf %135, %136 : vector<2x512xf32>
    %138 = arith.addf %132, %137 : vector<2x512xf32>
    %cst_15 = arith.constant 0.000000e+00 : f32
    %139 = vector.broadcast %cst_15 : f32 to vector<2x512xf32>
    %140 = arith.maximumf %138, %139 : vector<2x512xf32>
    %141 = vector.extract_strided_slice %140 {offsets = [0, 0], sizes = [1, 512], strides = [1, 1]} : vector<2x512xf32> to vector<1x512xf32>
    %142 = vector.extract_strided_slice %140 {offsets = [1, 0], sizes = [1, 512], strides = [1, 1]} : vector<2x512xf32> to vector<1x512xf32>
    %143 = arith.subf %141, %142 : vector<1x512xf32>
    %144 = math.exp %143 : vector<1x512xf32>
    %cst_16 = arith.constant 1.000000e+00 : f32
    %145 = vector.broadcast %cst_16 : f32 to vector<1x512xf32>
    %146 = arith.addf %145, %144 : vector<1x512xf32>
    %147 = tpu.reciprocal %146 {approx = true} : vector<1x512xf32> -> vector<1x512xf32>
    %148 = vector.shape_cast %147 : vector<1x512xf32> to vector<1x512xf32>
    %149 = vector.broadcast %148 : vector<1x512xf32> to vector<2x512xf32>
    %cst_17 = arith.constant 1.000000e+00 : f32
    %150 = vector.broadcast %cst_17 : f32 to vector<2x512xf32>
    %151 = arith.subf %150, %149 : vector<2x512xf32>
    %152 = arith.select %8, %151, %149 : vector<2x512xi1>, vector<2x512xf32>
    %153 = arith.index_cast %c0_i32_11 : i32 to index
    %c0_18 = arith.constant 0 : index
    %c0_19 = arith.constant 0 : index
    %154 = vector.load %arg8[%153, %c0_18, %c0_19] : memref<1x2x512xf32, #tpu.memory_space<vmem>>, vector<1x2x512xf32>
    %155 = vector.shape_cast %154 : vector<1x2x512xf32> to vector<2x512xf32>
    %156 = vector.shape_cast %152 : vector<2x512xf32> to vector<1x2x512xf32>
    tpu.vector_store %arg8[%153, %c0_18, %c0_19], %156 {strides = array<i32>} : memref<1x2x512xf32, #tpu.memory_space<vmem>>, vector<1x2x512xf32>,
    %cst_20 = arith.constant 0.000000e+00 : f32
    %157 = vector.broadcast %cst_20 : f32 to vector<1x512xf32>
    %158 = arith.cmpf ogt, %143, %157 : vector<1x512xf32>
    %c0_i32_21 = arith.constant 0 : i32
    %c1_i32 = arith.constant 1 : i32
    %159 = vector.broadcast %c0_i32_21 : i32 to vector<1x512xi32>
    %160 = vector.broadcast %c1_i32 : i32 to vector<1x512xi32>
    %161 = arith.select %158, %159, %160 : vector<1x512xi1>, vector<1x512xi32>
    %162 = arith.index_cast %c0_i32_11 : i32 to index
    %c0_22 = arith.constant 0 : index
    %c0_23 = arith.constant 0 : index
    %163 = vector.load %arg9[%162, %c0_22, %c0_23] : memref<1x1x512xi32, #tpu.memory_space<vmem>>, vector<1x1x512xi32>
    %164 = vector.shape_cast %163 : vector<1x1x512xi32> to vector<1x512xi32>
    %165 = vector.shape_cast %161 : vector<1x512xi32> to vector<1x1x512xi32>
    tpu.vector_store %arg9[%162, %c0_22, %c0_23], %165 {strides = array<i32>} : memref<1x1x512xi32, #tpu.memory_space<vmem>>, vector<1x1x512xi32>,
    %c1_i32_24 = arith.constant 1 : i32
    return
  }
  func.func @transform_0(%arg0: i32) -> (i32, i32, i32) {
    %c0_i32 = arith.constant 0 : i32
    %c0_i32_0 = arith.constant 0 : i32
    %c0_i32_1 = arith.constant 0 : i32
    return %arg0, %c0_i32, %c0_i32_0 : i32, i32, i32
  }
  func.func @transform_1(%arg0: i32) -> (i32, i32) {
    %c0_i32 = arith.constant 0 : i32
    %c0_i32_0 = arith.constant 0 : i32
    %c0_i32_1 = arith.constant 0 : i32
    return %c0_i32, %c0_i32_0 : i32, i32
  }
  func.func @transform_2(%arg0: i32) -> (i32, i32) {
    %c0_i32 = arith.constant 0 : i32
    %c0_i32_0 = arith.constant 0 : i32
    %c0_i32_1 = arith.constant 0 : i32
    return %c0_i32, %c0_i32_0 : i32, i32
  }
  func.func @transform_3(%arg0: i32) -> (i32, i32) {
    %c0_i32 = arith.constant 0 : i32
    %c0_i32_0 = arith.constant 0 : i32
    %c0_i32_1 = arith.constant 0 : i32
    return %c0_i32, %c0_i32_0 : i32, i32
  }
  func.func @transform_4(%arg0: i32) -> (i32, i32) {
    %c0_i32 = arith.constant 0 : i32
    %c0_i32_0 = arith.constant 0 : i32
    %c0_i32_1 = arith.constant 0 : i32
    return %c0_i32, %c0_i32_0 : i32, i32
  }
  func.func @transform_5(%arg0: i32) -> (i32, i32) {
    %c0_i32 = arith.constant 0 : i32
    %c0_i32_0 = arith.constant 0 : i32
    %c0_i32_1 = arith.constant 0 : i32
    return %c0_i32, %c0_i32_0 : i32, i32
  }
  func.func @transform_6(%arg0: i32) -> (i32, i32) {
    %c0_i32 = arith.constant 0 : i32
    %c0_i32_0 = arith.constant 0 : i32
    %c0_i32_1 = arith.constant 0 : i32
    return %c0_i32, %c0_i32_0 : i32, i32
  }
  func.func @transform_7(%arg0: i32) -> (i32, i32, i32) {
    %c0_i32 = arith.constant 0 : i32
    %c0_i32_0 = arith.constant 0 : i32
    %c0_i32_1 = arith.constant 0 : i32
    return %arg0, %c0_i32, %c0_i32_0 : i32, i32, i32
  }
  func.func @transform_8(%arg0: i32) -> (i32, i32, i32) {
    %c0_i32 = arith.constant 0 : i32
    %c0_i32_0 = arith.constant 0 : i32
    %c0_i32_1 = arith.constant 0 : i32
    return %arg0, %c0_i32, %c0_i32_0 : i32, i32, i32
  }
}

</mosaic_0001>

<bundles_post_ra>
// kernel: net_predict.1
= control target key start
LH: loop header
LB: loop body
LE: loop exit
PB: predicated region body
PF: predicated region fallthrough
CT: control target
= control target key end

     0   :  { %v624_v0 = vmov 2   ;;  %v625_v1 = vmov 1   ;;  %v626_v4 = vmov 0   ;;  %v627_v7 = vmov 3   ;;  %s825_s2 = inlined_call_operand.vmem [shape: f32[12,1], index: 2, kind: input, shape index: {}]   ;;  %s826_s1 = inlined_call_operand.vmem [shape: f32[12,4], index: 1, kind: input, shape index: {}]   ;;  %s827_s4 = inlined_call_operand.vmem [shape: f32[4,1], index: 4, kind: input, shape index: {}]   ;;  %s828_s3 = inlined_call_operand.vmem [shape: f32[4,12], index: 3, kind: input, shape index: {}]   ;;  %s829_s5 = inlined_call_operand.vmem [shape: f32[2,4], index: 5, kind: input, shape index: {}]   ;;  %s830_s6 = inlined_call_operand.vmem [shape: f32[2,1], index: 6, kind: input, shape index: {}]   ;;  %s831_s0 = inlined_call_operand.vmem [shape: f32[1,4,512], index: 0, kind: input, shape index: {}]   ;;  %s832_s8 = inlined_call_operand.vmem [shape: s32[1,1,512], index: 8, kind: output, shape index: {1}]   ;;  %s833_s7 = inlined_call_operand.vmem [shape: f32[1,2,512], index: 7, kind: output, shape index: {0}]  }
   0x1   :  { %585 = vset.pattern.permute.xlu0 %v624_v0  ;;  %584 = vset.pattern.permute.xlu2 %v625_v1  ;;  %v30_v2 = vld [vmem:[%s825_s2] sm:$0xff]  ;;  %v31_v5 = vld [vmem:[%s825_s2 + $0x8] sm:$0xf]  ;;  %v628_v10 = vmov 5   ;;  %v629_v11 = vmov 10   ;;  %v630_v12 = vmov 4  }
   0x2   :  { %v28_v3 = vld [vmem:[%s826_s1] sm:$0xff]  ;;  %583 = vset.pattern.permute.xlu1 %v626_v4  ;;  %v29_v6 = vld [vmem:[%s826_s1 + $0x8] sm:$0xf]  ;;  %v631_v14 = vmov 6   ;;  %v632_v15 = vmov 7   ;;  %v633_v16 = vmov 8  }
   0x3   :  { %128 = vperm.xlu0 %585, %v28_v3   ;;  %75 = vperm.xlu1 %583, %v30_v2   ;;  %v33_v8 = vld [vmem:[%s827_s4] sm:$0xf]  ;;  %v634_v17 = vmov 9   ;;  %v635_v18 = vmov 11   ;;  %v40_v24 = vld [vmem:[%s831_s0 + $0x8] sm:$0xff]  ;;  %vm534_vm0 = vcmask 1041408  }
   0x4   :  { %92 = vperm.xlu2 %584, %v28_v3   ;;  %v32_v9 = vld [vmem:[%s828_s3] sm:$0xf]  ;;  %v55_v28 = vperm.slane %v40_v24, 0  ;;  %v56_v29 = vperm.slane %v40_v24, 4  ;;  %v101_v32 = vperm.slane %v40_v24, 1  ;;  %v102_v33 = vperm.slane %v40_v24, 5 }
   0x5   :  { %v34_v13 = vld [vmem:[%s829_s5] sm:$0x3]  ;;  %v173_v36 = vperm.slane %v40_v24, 3  ;;  %v174_v37 = vperm.slane %v40_v24, 7  ;;  %v137_v40 = vperm.slane %v40_v24, 2  ;;  %v138_v41 = vperm.slane %v40_v24, 6 }
   0x6   :  { %v35_v19 = vld [vmem:[%s830_s6] sm:$0x3]  ;;  %v63_v44 = vperm.slane %v55_v28, 0  ;;  %v64_v45 = vperm.slane %v56_v29, 0  ;;  %v109_v48 = vperm.slane %v101_v32, 1  ;;  %v110_v49 = vperm.slane %v102_v33, 1 }
   0x7   :  { %v39_v23 = vld [vmem:[%s831_s0] sm:$0xff]  ;;  %v725_v53 = vperm.slane %v173_v36, 3  ;;  %v727_v54 = vperm.slane %v174_v37, 3  ;;  %v145_v58 = vperm.slane %v137_v40, 2  ;;  %v146_v59 = vperm.slane %v138_v41, 2 }
   0x8   :  { %v53_v26 = vperm.slane %v39_v23, 0  ;;  %v54_v27 = vperm.slane %v39_v23, 4  ;;  %v99_v30 = vperm.slane %v39_v23, 1  ;;  %v100_v31 = vperm.slane %v39_v23, 5 }
   0x9   :  { %v171_v34 = vperm.slane %v39_v23, 3  ;;  %v172_v35 = vperm.slane %v39_v23, 7  ;;  %v135_v38 = vperm.slane %v39_v23, 2  ;;  %v136_v39 = vperm.slane %v39_v23, 6 }
   0xa   :  { %v61_v42 = vperm.slane %v53_v26, 0  ;;  %v62_v43 = vperm.slane %v54_v27, 0  ;;  %v107_v46 = vperm.slane %v99_v30, 1  ;;  %v108_v47 = vperm.slane %v100_v31, 1 }
   0xb   :  { %586 = vset.pattern.permute.xlu0 %v626_v4  ;;  %80 = vperm.xlu1 %583, %v31_v5   ;;  %v721_v51 = vperm.slane %v171_v34, 3  ;;  %v723_v52 = vperm.slane %v172_v35, 3  ;;  %v143_v56 = vperm.slane %v135_v38, 2  ;;  %v144_v57 = vperm.slane %v136_v39, 2 }
   0xc   :  { %96 = vperm.xlu2 %584, %v29_v6   ;;  %43 = vperm.xlu0 %586, %v28_v3   ;;  %vm553_vm1 = vcmask 1040384   ;;  %vm555_vm5 = vcmask 1042434   ;;  %vm536_vm9 = vcmask 1045508   ;;  %vm538_vm10 = vcmask 1043456  }
  0x13   :  { %587 = vset.pattern.permute.xlu1 %v624_v0 }
  0x14   :  { %588 = vset.pattern.permute.xlu2 %v627_v7  ;;  %132 = vperm.xlu1 %587, %v29_v6  }
  0x15   :  { %48 = vperm.xlu0 %586, %v29_v6   ;;  %164 = vperm.xlu2 %588, %v28_v3  }
  0x1c   :  { %589 = vset.pattern.permute.xlu1 %v627_v7 }
  0x1d   :  { %222 = vperm.xlu0 %586, %v33_v8   ;;  %590 = vset.pattern.permute.xlu2 %v626_v4 }
  0x1e   :  { %168 = vperm.xlu1 %589, %v29_v6   ;;  %209 = vperm.xlu2 %590, %v32_v9  }
  0x25   :  { %595 = vset.pattern.permute.xlu0 %v628_v10 }
  0x26   :  { %591 = vset.pattern.permute.xlu1 %v625_v1  ;;  %294 = vperm.xlu0 %595, %v32_v9  }
  0x27   :  { %592 = vset.pattern.permute.xlu2 %v624_v0  ;;  %230 = vperm.xlu1 %591, %v32_v9  }
  0x28   :  { %246 = vperm.xlu2 %592, %v32_v9  }
  0x2e   :  { %600 = vset.pattern.permute.xlu0 %v629_v11 }
  0x2f   :  { %593 = vset.pattern.permute.xlu1 %v627_v7  ;;  %374 = vperm.xlu0 %600, %v32_v9  }
  0x30   :  { %594 = vset.pattern.permute.xlu2 %v630_v12  ;;  %262 = vperm.xlu1 %593, %v32_v9  }
  0x31   :  { %278 = vperm.xlu2 %594, %v32_v9  }
  0x37   :  { %605 = vset.pattern.permute.xlu0 %v624_v0 }
  0x38   :  { %596 = vset.pattern.permute.xlu1 %v631_v14  ;;  %448 = vperm.xlu0 %605, %v34_v13  }
  0x39   :  { %597 = vset.pattern.permute.xlu2 %v632_v15  ;;  %310 = vperm.xlu1 %596, %v32_v9  }
  0x3a   :  { %326 = vperm.xlu2 %597, %v32_v9  }
  0x40   :  { %607 = vset.pattern.permute.xlu0 %v627_v7 }
  0x41   :  { %598 = vset.pattern.permute.xlu1 %v633_v16 }
  0x42   :  { %599 = vset.pattern.permute.xlu2 %v634_v17  ;;  %342 = vperm.xlu1 %598, %v32_v9  }
  0x43   :  { %358 = vperm.xlu2 %599, %v32_v9  }
  0x4a   :  { %601 = vset.pattern.permute.xlu1 %v635_v18 }
  0x4b   :  { %390 = vperm.xlu1 %601, %v32_v9   ;;  %602 = vset.pattern.permute.xlu2 %v626_v4 }
  0x4c   :  { %411 = vperm.xlu2 %602, %v34_v13  }
  0x53   :  { %603 = vset.pattern.permute.xlu1 %v626_v4 }
  0x54   :  { %424 = vperm.xlu1 %603, %v35_v19   ;;  %604 = vset.pattern.permute.xlu2 %v625_v1 }
  0x55   :  { %432 = vperm.xlu2 %604, %v34_v13  }
  0x5c   :  { %606 = vset.pattern.permute.xlu1 %v627_v7 }
  0x5d   :  { %464 = vperm.xlu1 %606, %v34_v13  }
  0x5e   :  { %v93_v20 = vpop.permute.xlu2 %92 }
  0x5f   :  { %v111_v2 = vmul.f32 %v107_v46, %v93_v20  ;;  %v112_v3 = vmul.f32 %v108_v47, %v93_v20  ;;  %v113_v4 = vmul.f32 %v109_v48, %v93_v20  ;;  %v114_v5 = vmul.f32 %v110_v49, %v93_v20 }
  0x66   :  { %v713_v21 = vpop.permute.xlu2 %96 }
  0x6f   :  { %v165_v50 = vpop.permute.xlu2 %164 }
  0x70   :  { %v183_v18 = vmul.f32 %v721_v51, %v165_v50  ;;  %v184_v19 = vmul.f32 %v723_v52, %v165_v50  ;;  %v185_v23 = vmul.f32 %v725_v53, %v165_v50  ;;  %v186_v20 = vmul.f32 %v727_v54, %v165_v50 }
  0x75   :  { %v129_v22 = vpop.permute.xlu0 %128  ;;  %v76_v25 = vpop.permute.xlu1 %75 }
  0x76   :  { %v147_v10 = vmul.f32 %v143_v56, %v129_v22  ;;  %v148_v11 = vmul.f32 %v144_v57, %v129_v22  ;;  %v149_v12 = vmul.f32 %v145_v58, %v129_v22  ;;  %v150_v13 = vmul.f32 %v146_v59, %v129_v22 }
  0x78   :  { %v210_v26 = vpop.permute.xlu2 %209 }
  0x7d   :  { %v729_v55 = vpop.permute.xlu1 %80 }
  0x7e   :  { %v44_v60 = vpop.permute.xlu0 %43 }
  0x7f   :  { %v65_v61 = vmul.f32 %v61_v42, %v44_v60  ;;  %v66_v62 = vmul.f32 %v62_v43, %v44_v60  ;;  %v67_v63 = vmul.f32 %v63_v44, %v44_v60  ;;  %v68_v0 = vmul.f32 %v64_v45, %v44_v60 }
  0x81   :  { %v83_v6 = vadd.f32 %v76_v25, %v65_v61  ;;  %v84_v7 = vadd.f32 %v76_v25, %v66_v62  ;;  %v85_v8 = vadd.f32 %v76_v25, %v67_v63  ;;  %v86_v9 = vadd.f32 %v76_v25, %v68_v0 }
  0x82   :  { %v247_v39 = vpop.permute.xlu2 %246  ;;  %v115_v61 = vmul.f32 %v107_v46, %v713_v21  ;;  %v116_v62 = vmul.f32 %v108_v47, %v713_v21  ;;  %v117_v63 = vmul.f32 %v109_v48, %v713_v21  ;;  %v118_v0 = vmul.f32 %v110_v49, %v713_v21 }
  0x83   :  { %v119_v14 = vadd.f32 %v111_v2, %v83_v6  ;;  %v120_v15 = vadd.f32 %v112_v3, %v84_v7  ;;  %v121_v16 = vadd.f32 %v113_v4, %v85_v8  ;;  %v122_v17 = vadd.f32 %v114_v5, %v86_v9 }
  0x85   :  { %v155_v27 = vadd.f32 %v147_v10, %v119_v14  ;;  %v156_v25 = vadd.f32 %v148_v11, %v120_v15  ;;  %v157_v28 = vadd.f32 %v149_v12, %v121_v16  ;;  %v158_v29 = vadd.f32 %v150_v13, %v122_v17 }
  0x86   :  { %v133_v24 = vpop.permute.xlu1 %132 }
  0x87   :  { %v191_v30 = vadd.f32 %v183_v18, %v155_v27  ;;  %v192_v22 = vadd.f32 %v184_v19, %v156_v25  ;;  %v193_v31 = vadd.f32 %v185_v23, %v157_v28  ;;  %v194_v32 = vadd.f32 %v186_v20, %v158_v29  ;;  %v49_v33 = vpop.permute.xlu0 %48 }
  0x88   :  { %v69_v40 = vmul.f32 %v61_v42, %v49_v33  ;;  %v70_v41 = vmul.f32 %v62_v43, %v49_v33  ;;  %v71_v50 = vmul.f32 %v63_v44, %v49_v33  ;;  %v72_v60 = vmul.f32 %v64_v45, %v49_v33 }
  0x89   :  { %v735_v34 = vmax.f32 %v191_v30, 0.0  ;;  %v737_v35 = vmax.f32 %v192_v22, 0.0  ;;  %v739_v36 = vmax.f32 %v193_v31, 0.0  ;;  %v741_v37 = vmax.f32 %v194_v32, 0.0 }
  0x8a   :  { %v151_v42 = vmul.f32 %v143_v56, %v133_v24  ;;  %v152_v43 = vmul.f32 %v144_v57, %v133_v24  ;;  %v153_v44 = vmul.f32 %v145_v58, %v133_v24  ;;  %v154_v45 = vmul.f32 %v146_v59, %v133_v24 }
  0x8b   :  { %v249_v2 = vperm.slane %v735_v34, 2  ;;  %v250_v3 = vperm.slane %v737_v35, 2  ;;  %v251_v4 = vperm.slane %v739_v36, 2  ;;  %v252_v5 = vperm.slane %v741_v37, 2  ;;  %v279_v24 = vpop.permute.xlu2 %278 }
  0x8c   :  { %v87_v46 = vadd.f32 %v729_v55, %v69_v40  ;;  %v88_v47 = vadd.f32 %v729_v55, %v70_v41  ;;  %v89_v48 = vadd.f32 %v729_v55, %v71_v50  ;;  %v90_v21 = vadd.f32 %v729_v55, %v72_v60 }
  0x8d   :  { %v212_v49 = vperm.slane %v735_v34, 0  ;;  %v213_v6 = vperm.slane %v737_v35, 0  ;;  %v214_v7 = vperm.slane %v739_v36, 0  ;;  %v215_v8 = vperm.slane %v741_v37, 0 }
  0x8e   :  { %v253_v56 = vmul.f32 %v249_v2, %v247_v39  ;;  %v254_v57 = vmul.f32 %v250_v3, %v247_v39  ;;  %v255_v58 = vmul.f32 %v251_v4, %v247_v39  ;;  %v256_v59 = vmul.f32 %v252_v5, %v247_v39 }
  0x8f   :  { %v281_v9 = vperm.slane %v735_v34, 4  ;;  %v282_v10 = vperm.slane %v737_v35, 4  ;;  %v283_v11 = vperm.slane %v739_v36, 4  ;;  %v284_v55 = vperm.slane %v741_v37, 4  ;;  %v223_v17 = vpop.permute.xlu0 %222 }
  0x90   :  { %v169_v38 = vpop.permute.xlu1 %168  ;;  %v123_v13 = vadd.f32 %v115_v61, %v87_v46  ;;  %v124_v14 = vadd.f32 %v116_v62, %v88_v47  ;;  %v125_v15 = vadd.f32 %v117_v63, %v89_v48  ;;  %v126_v16 = vadd.f32 %v118_v0, %v90_v21 }
  0x91   :  { %v216_v18 = vmul.f32 %v212_v49, %v210_v26  ;;  %v217_v19 = vmul.f32 %v213_v6, %v210_v26  ;;  %v218_v23 = vmul.f32 %v214_v7, %v210_v26  ;;  %v219_v20 = vmul.f32 %v215_v8, %v210_v26 }
  0x92   :  { %v233_v27 = vperm.slane %v735_v34, 1  ;;  %v234_v25 = vperm.slane %v737_v35, 1  ;;  %v235_v28 = vperm.slane %v739_v36, 1  ;;  %v236_v29 = vperm.slane %v741_v37, 1 }
  0x93   :  { %v285_v30 = vmul.f32 %v281_v9, %v279_v24  ;;  %v286_v22 = vmul.f32 %v282_v10, %v279_v24  ;;  %v287_v31 = vmul.f32 %v283_v11, %v279_v24  ;;  %v288_v32 = vmul.f32 %v284_v55, %v279_v24 }
  0x94   :  { %v187_v50 = vmul.f32 %v721_v51, %v169_v38  ;;  %v188_v26 = vmul.f32 %v723_v52, %v169_v38  ;;  %v189_v60 = vmul.f32 %v725_v53, %v169_v38  ;;  %v190_v61 = vmul.f32 %v727_v54, %v169_v38  ;;  %v327_v24 = vpop.permute.xlu2 %326 }
  0x95   :  { %v225_v62 = vadd.f32 %v223_v17, %v216_v18  ;;  %v226_v63 = vadd.f32 %v223_v17, %v217_v19  ;;  %v227_v0 = vadd.f32 %v223_v17, %v218_v23  ;;  %v228_v2 = vadd.f32 %v223_v17, %v219_v20 }
  0x96   :  { %v159_v3 = vadd.f32 %v151_v42, %v123_v13  ;;  %v160_v4 = vadd.f32 %v152_v43, %v124_v14  ;;  %v161_v5 = vadd.f32 %v153_v44, %v125_v15  ;;  %v162_v46 = vadd.f32 %v154_v45, %v126_v16 }
  0x97   :  { %v297_v53 = vperm.slane %v735_v34, 5  ;;  %v298_v54 = vperm.slane %v737_v35, 5  ;;  %v299_v38 = vperm.slane %v739_v36, 5  ;;  %v300_v42 = vperm.slane %v741_v37, 5 }
  0x98   :  { %v195_v51 = vadd.f32 %v187_v50, %v159_v3  ;;  %v196_v7 = vadd.f32 %v188_v26, %v160_v4  ;;  %v197_v52 = vadd.f32 %v189_v60, %v161_v5  ;;  %v198_v8 = vadd.f32 %v190_v61, %v162_v46  ;;  %v295_v43 = vpop.permute.xlu0 %294 }
  0x99   :  { %v231_v12 = vpop.permute.xlu1 %230  ;;  %v265_v44 = vperm.slane %v735_v34, 3  ;;  %v266_v45 = vperm.slane %v737_v35, 3  ;;  %v267_v9 = vperm.slane %v739_v36, 3  ;;  %v268_v10 = vperm.slane %v741_v37, 3 }
  0x9a   :  { %v237_v33 = vmul.f32 %v233_v27, %v231_v12  ;;  %v238_v39 = vmul.f32 %v234_v25, %v231_v12  ;;  %v239_v40 = vmul.f32 %v235_v28, %v231_v12  ;;  %v240_v41 = vmul.f32 %v236_v29, %v231_v12 }
  0x9b   :  { %v301_v18 = vmul.f32 %v297_v53, %v295_v43  ;;  %v302_v19 = vmul.f32 %v298_v54, %v295_v43  ;;  %v303_v23 = vmul.f32 %v299_v38, %v295_v43  ;;  %v304_v20 = vmul.f32 %v300_v42, %v295_v43 }
  0x9c   :  { %v241_v47 = vadd.f32 %v237_v33, %v225_v62  ;;  %v242_v48 = vadd.f32 %v238_v39, %v226_v63  ;;  %v243_v21 = vadd.f32 %v239_v40, %v227_v0  ;;  %v244_v49 = vadd.f32 %v240_v41, %v228_v2 }
  0x9d   :  { %v313_v33 = vperm.slane %v735_v34, 6  ;;  %v783_v63 = vmax.f32 %v195_v51, 0.0  ;;  %v785_v0 = vmax.f32 %v196_v7, 0.0  ;;  %v787_v2 = vmax.f32 %v197_v52, 0.0  ;;  %v359_v38 = vpop.permute.xlu2 %358 }
  0x9e   :  { %v257_v11 = vadd.f32 %v253_v56, %v241_v47  ;;  %v258_v55 = vadd.f32 %v254_v57, %v242_v48  ;;  %v259_v12 = vadd.f32 %v255_v58, %v243_v21  ;;  %v260_v13 = vadd.f32 %v256_v59, %v244_v49 }
  0x9f   :  { %v314_v56 = vperm.slane %v737_v35, 6  ;;  %v315_v57 = vperm.slane %v739_v36, 6  ;;  %v316_v58 = vperm.slane %v741_v37, 6  ;;  %v789_v3 = vmax.f32 %v198_v8, 0.0 }
  0xa0   :  { %v332_v47 = vperm.slane %v741_v37, 7  ;;  %v361_v53 = vperm.slane %v783_v63, 1  ;;  %v362_v54 = vperm.slane %v785_v0, 1  ;;  %v346_v37 = vperm.slane %v785_v0, 0 }
  0xa1   :  { %v347_v42 = vperm.slane %v787_v2, 0  ;;  %v348_v43 = vperm.slane %v789_v3, 0 }
  0xa2   :  { %v263_v6 = vpop.permute.xlu1 %262  ;;  %v336_v8 = vmul.f32 %v332_v47, %v327_v24 }
  0xa3   :  { %v269_v14 = vmul.f32 %v265_v44, %v263_v6  ;;  %v270_v15 = vmul.f32 %v266_v45, %v263_v6  ;;  %v271_v16 = vmul.f32 %v267_v9, %v263_v6  ;;  %v272_v17 = vmul.f32 %v268_v10, %v263_v6 }
  0xa5   :  { %v273_v27 = vadd.f32 %v269_v14, %v257_v11  ;;  %v274_v25 = vadd.f32 %v270_v15, %v258_v55  ;;  %v275_v28 = vadd.f32 %v271_v16, %v259_v12  ;;  %v276_v29 = vadd.f32 %v272_v17, %v260_v13 }
  0xa6   :  { %v365_v15 = vmul.f32 %v361_v53, %v359_v38  ;;  %v366_v16 = vmul.f32 %v362_v54, %v359_v38 }
  0xa7   :  { %v289_v59 = vadd.f32 %v285_v30, %v273_v27  ;;  %v290_v39 = vadd.f32 %v286_v22, %v274_v25  ;;  %v291_v40 = vadd.f32 %v287_v31, %v275_v28  ;;  %v292_v41 = vadd.f32 %v288_v32, %v276_v29  ;;  %v375_v27 = vpop.permute.xlu0 %374 }
  0xa8   :  { %v329_v22 = vperm.slane %v735_v34, 7  ;;  %v330_v31 = vperm.slane %v737_v35, 7  ;;  %v331_v32 = vperm.slane %v739_v36, 7  ;;  %v363_v34 = vperm.slane %v787_v2, 1 }
  0xa9   :  { %v305_v4 = vadd.f32 %v301_v18, %v289_v59  ;;  %v306_v5 = vadd.f32 %v302_v19, %v290_v39  ;;  %v307_v46 = vadd.f32 %v303_v23, %v291_v40  ;;  %v308_v30 = vadd.f32 %v304_v20, %v292_v41 }
  0xaa   :  { %v333_v51 = vmul.f32 %v329_v22, %v327_v24  ;;  %v334_v7 = vmul.f32 %v330_v31, %v327_v24  ;;  %v335_v52 = vmul.f32 %v331_v32, %v327_v24  ;;  %v364_v35 = vperm.slane %v789_v3, 1  ;;  %v412_v31 = vpop.permute.xlu2 %411 }
  0xab   :  { %v311_v50 = vpop.permute.xlu1 %310  ;;  %v345_v36 = vperm.slane %v783_v63, 0  ;;  %v367_v17 = vmul.f32 %v363_v34, %v359_v38  ;;  %v377_v25 = vperm.slane %v783_v63, 2  ;;  %v378_v28 = vperm.slane %v785_v0, 2 }
  0xac   :  { %v317_v26 = vmul.f32 %v313_v33, %v311_v50  ;;  %v318_v60 = vmul.f32 %v314_v56, %v311_v50  ;;  %v319_v61 = vmul.f32 %v315_v57, %v311_v50  ;;  %v320_v62 = vmul.f32 %v316_v58, %v311_v50 }
  0xad   :  { %v368_v18 = vmul.f32 %v364_v35, %v359_v38  ;;  %v379_v29 = vperm.slane %v787_v2, 2  ;;  %v380_v33 = vperm.slane %v789_v3, 2  ;;  %v381_v39 = vmul.f32 %v377_v25, %v375_v27 }
  0xae   :  { %v321_v48 = vadd.f32 %v317_v26, %v305_v4  ;;  %v322_v21 = vadd.f32 %v318_v60, %v306_v5  ;;  %v323_v49 = vadd.f32 %v319_v61, %v307_v46  ;;  %v324_v6 = vadd.f32 %v320_v62, %v308_v30 }
  0xaf   :  { %v382_v40 = vmul.f32 %v378_v28, %v375_v27  ;;  %v383_v41 = vmul.f32 %v379_v29, %v375_v27  ;;  %v384_v50 = vmul.f32 %v380_v33, %v375_v27  ;;  %v393_v26 = vperm.slane %v783_v63, 3 }
  0xb0   :  { %v337_v45 = vadd.f32 %v333_v51, %v321_v48  ;;  %v338_v9 = vadd.f32 %v334_v7, %v322_v21  ;;  %v339_v10 = vadd.f32 %v335_v52, %v323_v49  ;;  %v340_v11 = vadd.f32 %v336_v8, %v324_v6 }
  0xb1   :  { %v394_v60 = vperm.slane %v785_v0, 3  ;;  %v395_v61 = vperm.slane %v787_v2, 3  ;;  %v396_v62 = vperm.slane %v789_v3, 3 }
  0xb4   :  { %v343_v44 = vpop.permute.xlu1 %342 }
  0xb5   :  { %v349_v55 = vmul.f32 %v345_v36, %v343_v44  ;;  %v350_v12 = vmul.f32 %v346_v37, %v343_v44  ;;  %v351_v13 = vmul.f32 %v347_v42, %v343_v44  ;;  %v352_v14 = vmul.f32 %v348_v43, %v343_v44 }
  0xb7   :  { %v353_v19 = vadd.f32 %v349_v55, %v337_v45  ;;  %v354_v23 = vadd.f32 %v350_v12, %v338_v9  ;;  %v355_v20 = vadd.f32 %v351_v13, %v339_v10  ;;  %v356_v24 = vadd.f32 %v352_v14, %v340_v11  ;;  %v433_v9 = vpop.permute.xlu2 %432 }
  0xb9   :  { %v369_v56 = vadd.f32 %v365_v15, %v353_v19  ;;  %v370_v57 = vadd.f32 %v366_v16, %v354_v23  ;;  %v371_v58 = vadd.f32 %v367_v17, %v355_v20  ;;  %v372_v59 = vadd.f32 %v368_v18, %v356_v24  ;;  %v449_v17 = vpop.permute.xlu0 %448 }
  0xbb   :  { %v385_v5 = vadd.f32 %v381_v39, %v369_v56  ;;  %v386_v46 = vadd.f32 %v382_v40, %v370_v57  ;;  %v387_v30 = vadd.f32 %v383_v41, %v371_v58  ;;  %v388_v22 = vadd.f32 %v384_v50, %v372_v59 }
  0xbd   :  { %v391_v4 = vpop.permute.xlu1 %390 }
  0xbe   :  { %v397_v32 = vmul.f32 %v393_v26, %v391_v4  ;;  %v398_v47 = vmul.f32 %v394_v60, %v391_v4  ;;  %v399_v48 = vmul.f32 %v395_v61, %v391_v4  ;;  %v400_v21 = vmul.f32 %v396_v62, %v391_v4 }
  0xc0   :  { %v401_v49 = vadd.f32 %v397_v32, %v385_v5  ;;  %v402_v6 = vadd.f32 %v398_v47, %v386_v46  ;;  %v403_v51 = vadd.f32 %v399_v48, %v387_v30  ;;  %v404_v63 = vadd.f32 %v400_v21, %v388_v22 }
  0xc2   :  { %v405_v7 = vmax.f32 %v401_v49, 0.0  ;;  %v406_v0 = vmax.f32 %v402_v6, 0.0  ;;  %v407_v52 = vmax.f32 %v403_v51, 0.0  ;;  %v408_v2 = vmax.f32 %v404_v63, 0.0 }
  0xc4   :  { %v414_v8 = vperm.slane %v405_v7, 0  ;;  %v415_v3 = vperm.slane %v406_v0, 0  ;;  %v416_v53 = vperm.slane %v407_v52, 0  ;;  %v417_v54 = vperm.slane %v408_v2, 0 }
  0xc5   :  { %v451_v42 = vperm.slane %v405_v7, 2  ;;  %v452_v43 = vperm.slane %v406_v0, 2  ;;  %v453_v44 = vperm.slane %v407_v52, 2  ;;  %v454_v45 = vperm.slane %v408_v2, 2 }
  0xc6   :  { %v418_v34 = vmul.f32 %v414_v8, %v412_v31  ;;  %v419_v35 = vmul.f32 %v415_v3, %v412_v31  ;;  %v420_v38 = vmul.f32 %v416_v53, %v412_v31  ;;  %v421_v36 = vmul.f32 %v417_v54, %v412_v31  ;;  %v425_v37 = vpop.permute.xlu1 %424 }
  0xc7   :  { %v435_v10 = vperm.slane %v405_v7, 1  ;;  %v436_v11 = vperm.slane %v406_v0, 1  ;;  %v437_v55 = vperm.slane %v407_v52, 1  ;;  %v438_v12 = vperm.slane %v408_v2, 1 }
  0xc8   :  { %v427_v13 = vadd.f32 %v425_v37, %v418_v34  ;;  %v428_v14 = vadd.f32 %v425_v37, %v419_v35  ;;  %v429_v15 = vadd.f32 %v425_v37, %v420_v38  ;;  %v430_v16 = vadd.f32 %v425_v37, %v421_v36 }
  0xc9   :  { %v439_v18 = vmul.f32 %v435_v10, %v433_v9  ;;  %v440_v19 = vmul.f32 %v436_v11, %v433_v9  ;;  %v441_v23 = vmul.f32 %v437_v55, %v433_v9  ;;  %v442_v20 = vmul.f32 %v438_v12, %v433_v9 }
  0xca   :  { %v455_v29 = vmul.f32 %v451_v42, %v449_v17  ;;  %v456_v33 = vmul.f32 %v452_v43, %v449_v17  ;;  %v457_v56 = vmul.f32 %v453_v44, %v449_v17  ;;  %v458_v57 = vmul.f32 %v454_v45, %v449_v17 }
  0xcb   :  { %v443_v24 = vadd.f32 %v439_v18, %v427_v13  ;;  %v444_v27 = vadd.f32 %v440_v19, %v428_v14  ;;  %v445_v25 = vadd.f32 %v441_v23, %v429_v15  ;;  %v446_v28 = vadd.f32 %v442_v20, %v430_v16 }
  0xcc   :  { %v467_v58 = vperm.slane %v405_v7, 3  ;;  %v468_v59 = vperm.slane %v406_v0, 3  ;;  %v469_v39 = vperm.slane %v407_v52, 3  ;;  %v470_v40 = vperm.slane %v408_v2, 3 }
  0xcd   :  { %v459_v50 = vadd.f32 %v455_v29, %v443_v24  ;;  %v460_v26 = vadd.f32 %v456_v33, %v444_v27  ;;  %v461_v60 = vadd.f32 %v457_v56, %v445_v25  ;;  %v462_v61 = vadd.f32 %v458_v57, %v446_v28 }
  0xce   :  { %v36_v3 = vlaneseq }
  0xcf   :  { %v465_v41 = vpop.permute.xlu1 %464 }
  0xd0   :  { %v471_v62 = vmul.f32 %v467_v58, %v465_v41  ;;  %v472_v4 = vmul.f32 %v468_v59, %v465_v41  ;;  %v473_v5 = vmul.f32 %v469_v39, %v465_v41  ;;  %v474_v46 = vmul.f32 %v470_v40, %v465_v41 }
  0xd1   :  { %vm560_vm7 = vcmp.lt.s32.totalorder %v36_v3, 512  ;;  %v37_v18 = vshrl.u32 %v36_v3, 7 }
  0xd2   :  { %v475_v30 = vadd.f32 %v471_v62, %v459_v50  ;;  %v476_v22 = vadd.f32 %v472_v4, %v460_v26  ;;  %v477_v31 = vadd.f32 %v473_v5, %v461_v60  ;;  %v478_v32 = vadd.f32 %v474_v46, %v462_v61 }
  0xd3   :  { %vm38_vm8 = vcmp.eq.s32.totalorder %v37_v18, 0 }
  0xd4   :  { %v479_v47 = vmax.f32 %v475_v30, 0.0  ;;  %v480_v48 = vmax.f32 %v476_v22, 0.0  ;;  %v481_v21 = vmax.f32 %v477_v31, 0.0  ;;  %v482_v49 = vmax.f32 %v478_v32, 0.0 }
  0xd6   :  { %v487_v6 = vrot.slane %v479_v47, 1  ;;  %v488_v51 = vrot.slane %v480_v48, 1  ;;  %v489_v63 = vrot.slane %v481_v21, 1  ;;  %v490_v7 = vrot.slane %v482_v49, 1 }
  0xd8   :  { %v495_v0 = vsub.f32 %v479_v47, %v487_v6  ;;  %v496_v52 = vsub.f32 %v480_v48, %v488_v51  ;;  %v497_v2 = vsub.f32 %v481_v21, %v489_v63  ;;  %v498_v8 = vsub.f32 %v482_v49, %v490_v7 }
  0xda   :  { %v499_v53 = vmul.f32 1.442695, %v495_v0  ;;  %v501_v54 = vmul.f32 1.442695, %v496_v52  ;;  %v503_v34 = vmul.f32 1.442695, %v497_v2 }
  0xdb   :  { %v505_v35 = vmul.f32 1.442695, %v498_v8  ;;  %vm542_vm2 = vcmp.gt.f32.partialorder %v495_v0, 0.0  ;;  %vm543_vm3 = vcmp.gt.f32.partialorder %v496_v52, 0.0  ;;  %vm544_vm4 = vcmp.gt.f32.partialorder %v497_v2, 0.0 }
  0xdc   :  { %608 = vpow2.f32 %v499_v53  ;;  %vm545_vm6 = vcmp.gt.f32.partialorder %v498_v8, 0.0  ;;  %v547_v38 = vsel %vm543_vm3, 0, %v625_v1  ;;  %v548_v36 = vsel %vm544_vm4, 0, %v625_v1 }
  0xdd   :  { %610 = vpow2.f32 %v501_v54  ;;  %v549_v37 = vsel %vm545_vm6, 0, %v625_v1  ;;  %v550_v42 = vrot.slane %v547_v38, 7  ;;  %v546_v43 = vsel %vm542_vm2, 0, %v625_v1 }
  0xde   :  { %612 = vpow2.f32 %v503_v34  ;;  %v551_v44 = vrot.slane %v548_v36, 6  ;;  %v552_v45 = vrot.slane %v549_v37, 5 }
  0xdf   :  { %614 = vpow2.f32 %v505_v35  ;;  %v554_v9 = vsel %vm553_vm1, %v546_v43, %v550_v42 }
  0xe0   :  { %v556_v10 = vsel %vm555_vm5, %v551_v44, %v552_v45 }
  0xe1   :  { %v557_v11 = vsel %vm534_vm0, %v554_v9, %v556_v10 }
  0xe2   :  { %v609_v55 = vpop.eup %608  ;;  %562 = vst.msk [vmem:[%s832_s8] sm:$0xf] %vm560_vm7, %v557_v11 }
  0xe3   :  { %v611_v12 = vpop.eup %610  ;;  %v507_v13 = vadd.f32 1.0, %v609_v55 }
  0xe4   :  { %v613_v14 = vpop.eup %612  ;;  %v508_v15 = vadd.f32 1.0, %v611_v12 }
  0xe5   :  { %v615_v1 = vpop.eup %614  ;;  %v509_v16 = vadd.f32 1.0, %v613_v14  ;;  %616 = vrcp.f32 %v507_v13 }
  0xe6   :  { %v510_v17 = vadd.f32 1.0, %v615_v1  ;;  %618 = vrcp.f32 %v508_v15 }
  0xe7   :  { %620 = vrcp.f32 %v509_v16 }
  0xe8   :  { %622 = vrcp.f32 %v510_v17 }
  0xeb   :  { %v617_v19 = vpop.eup %616 }
  0xec   :  { %v619_v23 = vpop.eup %618  ;;  %v515_v20 = vperm.slane %v617_v19, 0 }
  0xed   :  { %v621_v24 = vpop.eup %620  ;;  %v516_v27 = vperm.slane %v619_v23, 0 }
  0xee   :  { %v623_v25 = vpop.eup %622  ;;  %v517_v28 = vperm.slane %v621_v24, 0  ;;  %v519_v33 = vsub.f32 1.0, %v515_v20 }
  0xef   :  { %v518_v29 = vperm.slane %v623_v25, 0  ;;  %v520_v56 = vsub.f32 1.0, %v516_v27 }
  0xf0   :  { %v521_v57 = vsub.f32 1.0, %v517_v28  ;;  %v523_v41 = vsel %vm38_vm8, %v519_v33, %v515_v20 }
  0xf1   :  { %v522_v58 = vsub.f32 1.0, %v518_v29  ;;  %v524_v59 = vsel %vm38_vm8, %v520_v56, %v516_v27 }
  0xf2   :  { %v525_v39 = vsel %vm38_vm8, %v521_v57, %v517_v28  ;;  %v531_v40 = vrot.slane %v524_v59, 6 }
  0xf3   :  { %v526_v50 = vsel %vm38_vm8, %v522_v58, %v518_v29  ;;  %v532_v26 = vrot.slane %v525_v39, 4 }
  0xf4   :  { %v533_v60 = vrot.slane %v526_v50, 2  ;;  %v535_v61 = vsel %vm534_vm0, %v523_v41, %v531_v40 }
  0xf6   :  { %v537_v62 = vsel %vm536_vm9, %v532_v26, %v533_v60 }
  0xf7   :  { %v539_v4 = vsel %vm538_vm10, %v535_v61, %v537_v62 }
  0xf8   :  { %541 = vst [vmem:[%s833_s7] sm:$0xff] %v539_v4 }

</bundles_post_ra>
